<compile_context>
chip_gen: v5e
topology: v5e:2x2
jax: 0.10.0
libtpu: 0.0.40
codegen_flags: <defaults>
</compile_context>

<pallas_src>
import functools

import jax
import jax.numpy as jnp
from jax.experimental import pallas as pl
from jax.experimental.pallas import tpu as pltpu

LANE = 128      # lane width (last dim tile)
SUBLANE = 8     # sublane width (second-to-last dim tile)


def _ceil_to(v, m):
    return ((v + m - 1) // m) * m


def _pad2(a, rows, cols):
    return jnp.pad(a, ((0, rows - a.shape[0]), (0, cols - a.shape[1])))


def _make_mlp_kernel(n_linear, compute_dtype):
    """Kernel: refs = (x_padded, w0, b0, ..., w_{L-1}, b_{L-1}, out)."""

    def kernel(x_ref, *refs):
        out_ref = refs[-1]
        params = refs[:-1]

        h = x_ref[...]                                   # [TB, 128] compute_dtype
        for i in range(n_linear):
            w = params[2 * i][...]                       # [Kin, Kout] compute_dtype
            b = params[2 * i + 1][0, :].astype(jnp.float32)   # [Kout] f32 row
            acc = jnp.dot(h, w, preferred_element_type=jnp.float32) + b
            if i < n_linear - 1:                         # ReLU after all but last
                acc = jnp.maximum(acc, 0.0)              # f32 epilogue
                h = acc.astype(compute_dtype)
            else:
                h = acc
            # Dropout between hidden layers is identity at inference.
        out_ref[...] = h.astype(out_ref.dtype)

    return kernel


def nn_forward_pallas(x, weights, biases, *, compute_dtype=jnp.float32,
                      block_b=512):
    """NN forward pass in a single batch-tiled Pallas kernel.

    x:       [B, 7]  float32 (3 positions + 4 quaternion components (w,x,y,z))
    weights: list of [fan_in, fan_out] float32
    biases:  list of [1, fan_out]      float32
    """
    n_linear = len(weights)
    B = x.shape[0]
    out_dim = weights[-1].shape[1]

    # --- augmentation in the wrapper (augment_pos='r', augment_orient='a') ---
    r = jnp.sqrt(jnp.sum(x[:, :3] * x[:, :3], axis=1, keepdims=True))
    # rowan.to_axis_angle angle for unit (w,x,y,z) quats: 2*arccos(clip(w)).
    angles = 2.0 * jnp.arccos(jnp.clip(x[:, 3:4], -1.0, 1.0))
    h0 = jnp.concatenate([x, r, angles], axis=1)          # [B, in_dim + 2]

    # --- pad to lane-dense / sublane-aligned shapes ---
    b_pad = _ceil_to(B, SUBLANE)
    tb = b_pad if b_pad <= block_b else block_b           # batch tile (mult of 8)
    b_pad = _ceil_to(b_pad, tb)

    h0p = _pad2(h0, b_pad, LANE).astype(compute_dtype)    # zero-padded K columns

    args = [h0p]
    in_specs = [pl.BlockSpec((tb, LANE), lambda i: (i, 0))]
    for w, b in zip(weights, biases):
        k_in = _ceil_to(w.shape[0], LANE)
        k_out = _ceil_to(w.shape[1], LANE)
        wp = _pad2(w, k_in, k_out).astype(compute_dtype)  # zero-padded rows/cols
        bp = _pad2(jnp.tile(b.reshape(1, -1), (SUBLANE, 1)),
                   SUBLANE, k_out).astype(jnp.float32)    # sublane-broadcast bias
        args += [wp, bp]
        # Params stay VMEM-resident across batch grid steps (block (0,0)).
        in_specs += [pl.BlockSpec((k_in, k_out), lambda i: (0, 0)),
                     pl.BlockSpec((SUBLANE, k_out), lambda i: (0, 0))]

    out_pad_dim = _ceil_to(out_dim, LANE)
    out = pl.pallas_call(
        _make_mlp_kernel(n_linear, compute_dtype),
        out_shape=jax.ShapeDtypeStruct((b_pad, out_pad_dim), jnp.float32),
        grid=(b_pad // tb,),
        in_specs=in_specs,
        out_specs=pl.BlockSpec((tb, out_pad_dim), lambda i: (i, 0)),
        compiler_params=pltpu.CompilerParams(
            dimension_semantics=("parallel",)),           # megacore-shardable
    )(*args)

    return out[:B, :out_dim]                              # drop padding


def nn_forward_reference(x, weights, biases):
    """Pure-JAX f32 reference for correctness checking."""
    r = jnp.sqrt(jnp.sum(x[:, :3] ** 2, axis=1, keepdims=True))
    angles = 2.0 * jnp.arccos(jnp.clip(x[:, 3:4], -1.0, 1.0))
    h = jnp.concatenate([x, r, angles], axis=1)
    for i, (w, b) in enumerate(zip(weights, biases)):
        h = h @ w + b
        if i < len(weights) - 1:
            h = jnp.maximum(h, 0.0)
    return h


def init_params(key, in_dim, hidden_dim, out_dim, n_layers):
    """Deterministic init mimicking nn.Linear's uniform(-1/sqrt(fan_in), ...)."""
    # NN builds n_layers + 1 linear layers:
    #   [in_dim -> H], (n_layers-1) x [H -> H], [H -> out_dim]
    dims = [in_dim] + [hidden_dim] * n_layers + [out_dim]
    weights, biases = [], []
    for i in range(len(dims) - 1):
        fan_in, fan_out = dims[i], dims[i + 1]
        key, kw, kb = jax.random.split(key, 3)
        bound = 1.0 / jnp.sqrt(fan_in)
        weights.append(jax.random.uniform(
            kw, (fan_in, fan_out), jnp.float32, -bound, bound))
        biases.append(jax.random.uniform(
            kb, (1, fan_out), jnp.float32, -bound, bound))
    return weights, biases


if __name__ == "__main__":
    # Small shapes consistent with the module: input = 3 positions + 4 quat
    # components -> raw in_dim = 7; augmentation appends 2 columns -> 9.
    B = 8
    in_dim_raw = 7
    hidden_dim = 32
    out_dim = 4
    n_layers = 3

    key = jax.random.PRNGKey(0)
    key, kx, kq = jax.random.split(key, 3)

    pos = jax.random.normal(kx, (B, 3), jnp.float32)
    quat = jax.random.normal(kq, (B, 4), jnp.float32)
    quat = quat / jnp.linalg.norm(quat, axis=1, keepdims=True)   # unit quats
    x = jnp.concatenate([pos, quat], axis=1)                      # [B, 7]

    in_dim_aug = in_dim_raw + 2   # augment_pos='r' and augment_orient='a'
    weights, biases = init_params(key, in_dim_aug, hidden_dim, out_dim, n_layers)

    ref = nn_forward_reference(x, weights, biases)

    # Jit the whole wrapper so augment/pad/slice fuse with the pallas_call.
    fwd_f32 = jax.jit(functools.partial(nn_forward_pallas,
                                        compute_dtype=jnp.float32))
    fwd_bf16 = jax.jit(functools.partial(nn_forward_pallas,
                                         compute_dtype=jnp.bfloat16))

    # f32 path: exact vs. reference (zero padding does not change the math).
    out_f32 = jax.block_until_ready(fwd_f32(x, weights, biases))
    assert out_f32.shape == (B, out_dim)
    assert jnp.allclose(out_f32, ref, atol=1e-5, rtol=1e-5), "f32 mismatch"

    # bf16 activations/weights with f32 MXU accumulation (v6e/v7x fast path).
    out_bf16 = jax.block_until_ready(fwd_bf16(x, weights, biases))
    assert out_bf16.shape == (B, out_dim)
    assert jnp.allclose(out_bf16, ref, atol=5e-2, rtol=5e-2), "bf16 mismatch"

    print("KERNEL_OK")
</pallas_src>

<mosaic_0001>
module attributes {stable_mosaic.version = 11 : i64} {
  func.func @kernel(%arg0: i32, %arg1: memref<8x128xf32, #tpu.memory_space<vmem>>, %arg2: memref<128x128xf32, #tpu.memory_space<vmem>>, %arg3: memref<8x128xf32, #tpu.memory_space<vmem>>, %arg4: memref<128x128xf32, #tpu.memory_space<vmem>>, %arg5: memref<8x128xf32, #tpu.memory_space<vmem>>, %arg6: memref<128x128xf32, #tpu.memory_space<vmem>>, %arg7: memref<8x128xf32, #tpu.memory_space<vmem>>, %arg8: memref<128x128xf32, #tpu.memory_space<vmem>>, %arg9: memref<8x128xf32, #tpu.memory_space<vmem>>, %arg10: memref<8x128xf32, #tpu.memory_space<vmem>>) attributes {dimension_semantics = [#tpu.dimension_semantics<parallel>], iteration_bounds = array<i64: 1>, scalar_prefetch = 0 : i64, scratch_operands = 0 : i64, tpu.core_type = #tpu.core_type<tc>, window_params = [{transform_indices = @transform_0, window_bounds = array<i64: 8, 128>}, {pipeline_mode = #tpu.pipeline_mode<synchronous>, transform_indices = @transform_1, window_bounds = array<i64: 128, 128>}, {pipeline_mode = #tpu.pipeline_mode<synchronous>, transform_indices = @transform_2, window_bounds = array<i64: 8, 128>}, {pipeline_mode = #tpu.pipeline_mode<synchronous>, transform_indices = @transform_3, window_bounds = array<i64: 128, 128>}, {pipeline_mode = #tpu.pipeline_mode<synchronous>, transform_indices = @transform_4, window_bounds = array<i64: 8, 128>}, {pipeline_mode = #tpu.pipeline_mode<synchronous>, transform_indices = @transform_5, window_bounds = array<i64: 128, 128>}, {pipeline_mode = #tpu.pipeline_mode<synchronous>, transform_indices = @transform_6, window_bounds = array<i64: 8, 128>}, {pipeline_mode = #tpu.pipeline_mode<synchronous>, transform_indices = @transform_7, window_bounds = array<i64: 128, 128>}, {pipeline_mode = #tpu.pipeline_mode<synchronous>, transform_indices = @transform_8, window_bounds = array<i64: 8, 128>}, {transform_indices = @transform_9, window_bounds = array<i64: 8, 128>}]} {
    %c0 = arith.constant 0 : index
    %c0_0 = arith.constant 0 : index
    %0 = vector.load %arg1[%c0, %c0_0] : memref<8x128xf32, #tpu.memory_space<vmem>>, vector<8x128xf32>
    %c0_1 = arith.constant 0 : index
    %c0_2 = arith.constant 0 : index
    %1 = vector.load %arg2[%c0_1, %c0_2] : memref<128x128xf32, #tpu.memory_space<vmem>>, vector<128x128xf32>
    %c0_3 = arith.constant 0 : index
    %c0_4 = arith.constant 0 : index
    %2 = vector.load %arg3[%c0_3, %c0_4] : memref<8x128xf32, #tpu.memory_space<vmem>>, vector<1x128xf32>
    %3 = vector.shape_cast %2 : vector<1x128xf32> to vector<128xf32>
    %cst = arith.constant dense<0.000000e+00> : vector<8x128xf32>
    %4 = tpu.matmul %0, %1, %cst {dimension_numbers = #tpu.dot_dimension_numbers<[1], [0], [0], [1], [0, 0, 1, 1], [], []>} : vector<8x128xf32>, vector<128x128xf32>, vector<8x128xf32> -> vector<8x128xf32>
    %5 = vector.shape_cast %3 : vector<128xf32> to vector<1x128xf32>
    %6 = vector.broadcast %5 : vector<1x128xf32> to vector<8x128xf32>
    %7 = arith.addf %4, %6 : vector<8x128xf32>
    %cst_5 = arith.constant 0.000000e+00 : f32
    %8 = vector.broadcast %cst_5 : f32 to vector<8x128xf32>
    %9 = arith.maximumf %7, %8 : vector<8x128xf32>
    %c0_6 = arith.constant 0 : index
    %c0_7 = arith.constant 0 : index
    %10 = vector.load %arg4[%c0_6, %c0_7] : memref<128x128xf32, #tpu.memory_space<vmem>>, vector<128x128xf32>
    %c0_8 = arith.constant 0 : index
    %c0_9 = arith.constant 0 : index
    %11 = vector.load %arg5[%c0_8, %c0_9] : memref<8x128xf32, #tpu.memory_space<vmem>>, vector<1x128xf32>
    %12 = vector.shape_cast %11 : vector<1x128xf32> to vector<128xf32>
    %cst_10 = arith.constant dense<0.000000e+00> : vector<8x128xf32>
    %13 = tpu.matmul %9, %10, %cst_10 {dimension_numbers = #tpu.dot_dimension_numbers<[1], [0], [0], [1], [0, 0, 1, 1], [], []>} : vector<8x128xf32>, vector<128x128xf32>, vector<8x128xf32> -> vector<8x128xf32>
    %14 = vector.shape_cast %12 : vector<128xf32> to vector<1x128xf32>
    %15 = vector.broadcast %14 : vector<1x128xf32> to vector<8x128xf32>
    %16 = arith.addf %13, %15 : vector<8x128xf32>
    %cst_11 = arith.constant 0.000000e+00 : f32
    %17 = vector.broadcast %cst_11 : f32 to vector<8x128xf32>
    %18 = arith.maximumf %16, %17 : vector<8x128xf32>
    %c0_12 = arith.constant 0 : index
    %c0_13 = arith.constant 0 : index
    %19 = vector.load %arg6[%c0_12, %c0_13] : memref<128x128xf32, #tpu.memory_space<vmem>>, vector<128x128xf32>
    %c0_14 = arith.constant 0 : index
    %c0_15 = arith.constant 0 : index
    %20 = vector.load %arg7[%c0_14, %c0_15] : memref<8x128xf32, #tpu.memory_space<vmem>>, vector<1x128xf32>
    %21 = vector.shape_cast %20 : vector<1x128xf32> to vector<128xf32>
    %cst_16 = arith.constant dense<0.000000e+00> : vector<8x128xf32>
    %22 = tpu.matmul %18, %19, %cst_16 {dimension_numbers = #tpu.dot_dimension_numbers<[1], [0], [0], [1], [0, 0, 1, 1], [], []>} : vector<8x128xf32>, vector<128x128xf32>, vector<8x128xf32> -> vector<8x128xf32>
    %23 = vector.shape_cast %21 : vector<128xf32> to vector<1x128xf32>
    %24 = vector.broadcast %23 : vector<1x128xf32> to vector<8x128xf32>
    %25 = arith.addf %22, %24 : vector<8x128xf32>
    %cst_17 = arith.constant 0.000000e+00 : f32
    %26 = vector.broadcast %cst_17 : f32 to vector<8x128xf32>
    %27 = arith.maximumf %25, %26 : vector<8x128xf32>
    %c0_18 = arith.constant 0 : index
    %c0_19 = arith.constant 0 : index
    %28 = vector.load %arg8[%c0_18, %c0_19] : memref<128x128xf32, #tpu.memory_space<vmem>>, vector<128x128xf32>
    %c0_20 = arith.constant 0 : index
    %c0_21 = arith.constant 0 : index
    %29 = vector.load %arg9[%c0_20, %c0_21] : memref<8x128xf32, #tpu.memory_space<vmem>>, vector<1x128xf32>
    %30 = vector.shape_cast %29 : vector<1x128xf32> to vector<128xf32>
    %cst_22 = arith.constant dense<0.000000e+00> : vector<8x128xf32>
    %31 = tpu.matmul %27, %28, %cst_22 {dimension_numbers = #tpu.dot_dimension_numbers<[1], [0], [0], [1], [0, 0, 1, 1], [], []>} : vector<8x128xf32>, vector<128x128xf32>, vector<8x128xf32> -> vector<8x128xf32>
    %32 = vector.shape_cast %30 : vector<128xf32> to vector<1x128xf32>
    %33 = vector.broadcast %32 : vector<1x128xf32> to vector<8x128xf32>
    %34 = arith.addf %31, %33 : vector<8x128xf32>
    %c0_23 = arith.constant 0 : index
    %c0_24 = arith.constant 0 : index
    %35 = vector.load %arg10[%c0_23, %c0_24] : memref<8x128xf32, #tpu.memory_space<vmem>>, vector<8x128xf32>
    tpu.vector_store %arg10[%c0_23, %c0_24], %34 {strides = array<i32>} : memref<8x128xf32, #tpu.memory_space<vmem>>, vector<8x128xf32>,
    return
  }
  func.func @transform_0(%arg0: i32) -> (i32, i32) {
    %c0_i32 = arith.constant 0 : i32
    %c0_i32_0 = arith.constant 0 : i32
    return %arg0, %c0_i32 : i32, i32
  }
  func.func @transform_1(%arg0: i32) -> (i32, i32) {
    %c0_i32 = arith.constant 0 : i32
    %c0_i32_0 = arith.constant 0 : i32
    %c0_i32_1 = arith.constant 0 : i32
    return %c0_i32, %c0_i32_0 : i32, i32
  }
  func.func @transform_2(%arg0: i32) -> (i32, i32) {
    %c0_i32 = arith.constant 0 : i32
    %c0_i32_0 = arith.constant 0 : i32
    %c0_i32_1 = arith.constant 0 : i32
    return %c0_i32, %c0_i32_0 : i32, i32
  }
  func.func @transform_3(%arg0: i32) -> (i32, i32) {
    %c0_i32 = arith.constant 0 : i32
    %c0_i32_0 = arith.constant 0 : i32
    %c0_i32_1 = arith.constant 0 : i32
    return %c0_i32, %c0_i32_0 : i32, i32
  }
  func.func @transform_4(%arg0: i32) -> (i32, i32) {
    %c0_i32 = arith.constant 0 : i32
    %c0_i32_0 = arith.constant 0 : i32
    %c0_i32_1 = arith.constant 0 : i32
    return %c0_i32, %c0_i32_0 : i32, i32
  }
  func.func @transform_5(%arg0: i32) -> (i32, i32) {
    %c0_i32 = arith.constant 0 : i32
    %c0_i32_0 = arith.constant 0 : i32
    %c0_i32_1 = arith.constant 0 : i32
    return %c0_i32, %c0_i32_0 : i32, i32
  }
  func.func @transform_6(%arg0: i32) -> (i32, i32) {
    %c0_i32 = arith.constant 0 : i32
    %c0_i32_0 = arith.constant 0 : i32
    %c0_i32_1 = arith.constant 0 : i32
    return %c0_i32, %c0_i32_0 : i32, i32
  }
  func.func @transform_7(%arg0: i32) -> (i32, i32) {
    %c0_i32 = arith.constant 0 : i32
    %c0_i32_0 = arith.constant 0 : i32
    %c0_i32_1 = arith.constant 0 : i32
    return %c0_i32, %c0_i32_0 : i32, i32
  }
  func.func @transform_8(%arg0: i32) -> (i32, i32) {
    %c0_i32 = arith.constant 0 : i32
    %c0_i32_0 = arith.constant 0 : i32
    %c0_i32_1 = arith.constant 0 : i32
    return %c0_i32, %c0_i32_0 : i32, i32
  }
  func.func @transform_9(%arg0: i32) -> (i32, i32) {
    %c0_i32 = arith.constant 0 : i32
    %c0_i32_0 = arith.constant 0 : i32
    return %arg0, %c0_i32 : i32, i32
  }
}

</mosaic_0001>

<bundles_post_ra>
// kernel: nn_forward_pallas.1
= control target key start
LH: loop header
LB: loop body
LE: loop exit
PB: predicated region body
PF: predicated region fallthrough
CT: control target
= control target key end

     0   :  { %s457_s1 = inlined_call_operand.vmem [shape: f32[128,128], index: 1, kind: input, shape index: {}]   ;;  %s458_s3 = inlined_call_operand.vmem [shape: f32[128,128], index: 3, kind: input, shape index: {}]   ;;  %s459_s2 = inlined_call_operand.vmem [shape: f32[8,128], index: 2, kind: input, shape index: {}]   ;;  %s460_s0 = inlined_call_operand.vmem [shape: f32[8,128], index: 0, kind: input, shape index: {}]   ;;  %s461_s4 = inlined_call_operand.vmem [shape: f32[8,128], index: 4, kind: input, shape index: {}]   ;;  %s462_s5 = inlined_call_operand.vmem [shape: f32[128,128], index: 5, kind: input, shape index: {}]   ;;  %s463_s6 = inlined_call_operand.vmem [shape: f32[8,128], index: 6, kind: input, shape index: {}]   ;;  %s464_s7 = inlined_call_operand.vmem [shape: f32[128,128], index: 7, kind: input, shape index: {}]   ;;  %s465_s8 = inlined_call_operand.vmem [shape: f32[8,128], index: 8, kind: input, shape index: {}]   ;;  %s466_s9 = inlined_call_operand.vmem [shape: f32[8,128], index: 9, kind: output, shape index: {}]  }
   0x1   :  { %v48_v0 = vld [vmem:[%s457_s1 + $0x78] sm:$0xff]  ;;  %v47_v1 = vld [vmem:[%s457_s1 + $0x70] sm:$0xff]  ;;  %v46_v2 = vld [vmem:[%s457_s1 + $0x68] sm:$0xff] }
   0x2   :  { %51 = vmatpush.msra.mxu0 %v48_v0  ;;  %v45_v3 = vld [vmem:[%s457_s1 + $0x60] sm:$0xff]  ;;  %v87_v4 = vld [vmem:[%s458_s3 + $0x78] sm:$0xff]  ;;  %v86_v6 = vld [vmem:[%s458_s3 + $0x70] sm:$0xff] }
   0x3   :  { %v44_v5 = vld [vmem:[%s457_s1 + $0x58] sm:$0xff]  ;;  %90 = vmatpush.msra.mxu1 %v87_v4  ;;  %v85_v7 = vld [vmem:[%s458_s3 + $0x68] sm:$0xff]  ;;  %v43_v8 = vld [vmem:[%s457_s1 + $0x50] sm:$0xff] }
   0x4   :  { %52 = vmatpush.msra.mxu0 %v47_v1  ;;  %v84_v9 = vld [vmem:[%s458_s3 + $0x60] sm:$0xff]  ;;  %v42_v10 = vld [vmem:[%s457_s1 + $0x48] sm:$0xff]  ;;  %v83_v11 = vld [vmem:[%s458_s3 + $0x58] sm:$0xff] }
   0x5   :  { %91 = vmatpush.msra.mxu1 %v86_v6  ;;  %v41_v12 = vld [vmem:[%s457_s1 + $0x40] sm:$0xff]  ;;  %v82_v13 = vld [vmem:[%s458_s3 + $0x50] sm:$0xff]  ;;  %v40_v14 = vld [vmem:[%s457_s1 + $0x38] sm:$0xff] }
   0x6   :  { %53 = vmatpush.msra.mxu0 %v46_v2  ;;  %v81_v15 = vld [vmem:[%s458_s3 + $0x48] sm:$0xff]  ;;  %v39_v16 = vld [vmem:[%s457_s1 + $0x30] sm:$0xff]  ;;  %v80_v17 = vld [vmem:[%s458_s3 + $0x40] sm:$0xff] }
   0x7   :  { %92 = vmatpush.msra.mxu1 %v85_v7  ;;  %v38_v18 = vld [vmem:[%s457_s1 + $0x28] sm:$0xff]  ;;  %v79_v19 = vld [vmem:[%s458_s3 + $0x38] sm:$0xff]  ;;  %v37_v20 = vld [vmem:[%s457_s1 + $0x20] sm:$0xff] }
   0x8   :  { %54 = vmatpush.msra.mxu0 %v45_v3  ;;  %v78_v21 = vld [vmem:[%s458_s3 + $0x30] sm:$0xff]  ;;  %v36_v22 = vld [vmem:[%s457_s1 + $0x18] sm:$0xff]  ;;  %v77_v23 = vld [vmem:[%s458_s3 + $0x28] sm:$0xff] }
   0x9   :  { %93 = vmatpush.msra.mxu1 %v84_v9  ;;  %v35_v24 = vld [vmem:[%s457_s1 + $0x10] sm:$0xff]  ;;  %v76_v25 = vld [vmem:[%s458_s3 + $0x20] sm:$0xff]  ;;  %v34_v26 = vld [vmem:[%s457_s1 + $0x8] sm:$0xff] }
   0xa   :  { %55 = vmatpush.msra.mxu0 %v44_v5  ;;  %v75_v27 = vld [vmem:[%s458_s3 + $0x18] sm:$0xff]  ;;  %v33_v28 = vld [vmem:[%s457_s1] sm:$0xff]  ;;  %v74_v30 = vld [vmem:[%s458_s3 + $0x10] sm:$0xff] }
   0xb   :  { %94 = vmatpush.msra.mxu1 %v83_v11  ;;  %v32_v29 = vld [vmem:[%s460_s0] sm:$0xff]  ;;  %v73_v31 = vld [vmem:[%s458_s3 + $0x8] sm:$0xff]  ;;  %v126_v33 = vld [vmem:[%s462_s5 + $0x78] sm:$0xff] }
   0xc   :  { %56 = vmatpush.msra.mxu0 %v43_v8  ;;  %v72_v32 = vld [vmem:[%s458_s3] sm:$0xff]  ;;  %v125_v34 = vld [vmem:[%s462_s5 + $0x70] sm:$0xff]  ;;  %129 = vmatpush.msra.mxu2 %v126_v33  ;;  %v124_v35 = vld [vmem:[%s462_s5 + $0x68] sm:$0xff] }
   0xd   :  { %95 = vmatpush.msra.mxu1 %v82_v13  ;;  %v123_v36 = vld [vmem:[%s462_s5 + $0x60] sm:$0xff]  ;;  %v122_v37 = vld [vmem:[%s462_s5 + $0x58] sm:$0xff]  ;;  %v121_v38 = vld [vmem:[%s462_s5 + $0x50] sm:$0xff] }
   0xe   :  { %57 = vmatpush.msra.mxu0 %v42_v10  ;;  %130 = vmatpush.msra.mxu2 %v125_v34  ;;  %v120_v39 = vld [vmem:[%s462_s5 + $0x48] sm:$0xff]  ;;  %v119_v40 = vld [vmem:[%s462_s5 + $0x40] sm:$0xff]  ;;  %v118_v41 = vld [vmem:[%s462_s5 + $0x38] sm:$0xff] }
   0xf   :  { %96 = vmatpush.msra.mxu1 %v81_v15  ;;  %v117_v42 = vld [vmem:[%s462_s5 + $0x30] sm:$0xff]  ;;  %v116_v43 = vld [vmem:[%s462_s5 + $0x28] sm:$0xff]  ;;  %v115_v44 = vld [vmem:[%s462_s5 + $0x20] sm:$0xff] }
  0x10   :  { %58 = vmatpush.msra.mxu0 %v41_v12  ;;  %131 = vmatpush.msra.mxu2 %v124_v35  ;;  %v114_v45 = vld [vmem:[%s462_s5 + $0x18] sm:$0xff]  ;;  %v193_v46 = vld [vmem:[%s459_s2] ss:$0 sm:$0xff]  ;;  %v113_v50 = vld [vmem:[%s462_s5 + $0x10] sm:$0xff] }
  0x11   :  { %97 = vmatpush.msra.mxu1 %v80_v17  ;;  %v112_v51 = vld [vmem:[%s462_s5 + $0x8] sm:$0xff]  ;;  %v111_v52 = vld [vmem:[%s462_s5] sm:$0xff]  ;;  %v165_v53 = vld [vmem:[%s464_s7 + $0x78] sm:$0xff] }
  0x12   :  { %59 = vmatpush.msra.mxu0 %v40_v14  ;;  %132 = vmatpush.msra.mxu2 %v123_v36  ;;  %v164_v54 = vld [vmem:[%s464_s7 + $0x70] sm:$0xff]  ;;  %v163_v55 = vld [vmem:[%s464_s7 + $0x68] sm:$0xff]  ;;  %v162_v56 = vld [vmem:[%s464_s7 + $0x60] sm:$0xff] }
  0x13   :  { %98 = vmatpush.msra.mxu1 %v79_v19  ;;  %168 = vmatpush.msra.mxu3 %v165_v53  ;;  %v161_v57 = vld [vmem:[%s464_s7 + $0x58] sm:$0xff]  ;;  %v160_v58 = vld [vmem:[%s464_s7 + $0x50] sm:$0xff]  ;;  %v159_v59 = vld [vmem:[%s464_s7 + $0x48] sm:$0xff] }
  0x14   :  { %60 = vmatpush.msra.mxu0 %v39_v16  ;;  %133 = vmatpush.msra.mxu2 %v122_v37  ;;  %v158_v60 = vld [vmem:[%s464_s7 + $0x40] sm:$0xff]  ;;  %v157_v61 = vld [vmem:[%s464_s7 + $0x38] sm:$0xff]  ;;  %v156_v62 = vld [vmem:[%s464_s7 + $0x30] sm:$0xff] }
  0x15   :  { %99 = vmatpush.msra.mxu1 %v78_v21  ;;  %169 = vmatpush.msra.mxu3 %v164_v54  ;;  %v155_v63 = vld [vmem:[%s464_s7 + $0x28] sm:$0xff]  ;;  %v154_v0 = vld [vmem:[%s464_s7 + $0x20] sm:$0xff]  ;;  %v153_v1 = vld [vmem:[%s464_s7 + $0x18] sm:$0xff] }
  0x16   :  { %61 = vmatpush.msra.mxu0 %v38_v18  ;;  %134 = vmatpush.msra.mxu2 %v121_v38  ;;  %v194_v2 = vld [vmem:[%s461_s4] ss:$0 sm:$0xff]  ;;  %v152_v6 = vld [vmem:[%s464_s7 + $0x10] sm:$0xff]  ;;  %v151_v7 = vld [vmem:[%s464_s7 + $0x8] sm:$0xff] }
  0x17   :  { %100 = vmatpush.msra.mxu1 %v77_v23  ;;  %170 = vmatpush.msra.mxu3 %v163_v55  ;;  %v150_v8 = vld [vmem:[%s464_s7] sm:$0xff] }
  0x18   :  { %62 = vmatpush.msra.mxu0 %v37_v20  ;;  %135 = vmatpush.msra.mxu2 %v120_v39  ;;  %v195_v9 = vld [vmem:[%s463_s6] ss:$0 sm:$0xff] }
  0x19   :  { %101 = vmatpush.msra.mxu1 %v76_v25  ;;  %171 = vmatpush.msra.mxu3 %v162_v56  ;;  %v196_v13 = vld [vmem:[%s465_s8] ss:$0 sm:$0xff] }
  0x1a   :  { %63 = vmatpush.msra.mxu0 %v36_v22  ;;  %136 = vmatpush.msra.mxu2 %v119_v40 }
  0x1b   :  { %102 = vmatpush.msra.mxu1 %v75_v27  ;;  %172 = vmatpush.msra.mxu3 %v161_v57 }
  0x1c   :  { %64 = vmatpush.msra.mxu0 %v35_v24  ;;  %137 = vmatpush.msra.mxu2 %v118_v41 }
  0x1d   :  { %103 = vmatpush.msra.mxu1 %v74_v30  ;;  %173 = vmatpush.msra.mxu3 %v160_v58 }
  0x1e   :  { %65 = vmatpush.msra.mxu0 %v34_v26  ;;  %138 = vmatpush.msra.mxu2 %v117_v42 }
  0x1f   :  { %104 = vmatpush.msra.mxu1 %v73_v31  ;;  %174 = vmatpush.msra.mxu3 %v159_v59 }
  0x20   :  { %66 = vmatpush.msra.mxu0 %v33_v28  ;;  %139 = vmatpush.msra.mxu2 %v116_v43 }
  0x21   :  { %67 = vmatmul.f32.vlgmr.msra.gmra.mxu0 %v32_v29  ;;  %105 = vmatpush.msra.mxu1 %v72_v32 }
  0x22   :  { %140 = vmatpush.msra.mxu2 %v115_v44  ;;  %175 = vmatpush.msra.mxu3 %v158_v60 }
  0x24   :  { %141 = vmatpush.msra.mxu2 %v114_v45  ;;  %176 = vmatpush.msra.mxu3 %v157_v61 }
  0x26   :  { %142 = vmatpush.msra.mxu2 %v113_v50  ;;  %177 = vmatpush.msra.mxu3 %v156_v62 }
  0x28   :  { %143 = vmatpush.msra.mxu2 %v112_v51  ;;  %178 = vmatpush.msra.mxu3 %v155_v63 }
  0x2a   :  { %144 = vmatpush.msra.mxu2 %v111_v52  ;;  %179 = vmatpush.msra.mxu3 %v154_v0 }
  0x2c   :  { %180 = vmatpush.msra.mxu3 %v153_v1 }
  0x2e   :  { %181 = vmatpush.msra.mxu3 %v152_v6 }
  0x30   :  { %182 = vmatpush.msra.mxu3 %v151_v7 }
  0x32   :  { %183 = vmatpush.msra.mxu3 %v150_v8 }
  0x9e   :  { %v68_v47 = vpop.f32.mrf.mxu0 }
  0x9f   :  { %v69_v48 = vadd.f32 %v193_v46, %v68_v47 }
  0xa1   :  { %v71_v49 = vmax.f32 %v69_v48, 0.0 }
  0xa3   :  { %106 = vmatmul.f32.vlgmr.msra.gmra.mxu1 %v71_v49 }
 0x120   :  { %v107_v3 = vpop.f32.mrf.mxu1 }
 0x121   :  { %v108_v4 = vadd.f32 %v194_v2, %v107_v3 }
 0x123   :  { %v110_v5 = vmax.f32 %v108_v4, 0.0 }
 0x125   :  { %145 = vmatmul.f32.vlgmr.msra.gmra.mxu2 %v110_v5 }
 0x1a8   :  { %v146_v10 = vpop.f32.mrf.mxu2 }
 0x1a9   :  { %v147_v11 = vadd.f32 %v195_v9, %v146_v10 }
 0x1ab   :  { %v149_v12 = vmax.f32 %v147_v11, 0.0 }
 0x1ad   :  { %184 = vmatmul.f32.vlgmr.msra.gmra.mxu3 %v149_v12 }
 0x230   :  { %v185_v14 = vpop.f32.mrf.mxu3 }
 0x231   :  { %v186_v15 = vadd.f32 %v196_v13, %v185_v14 }
 0x233   :  { %188 = vst [vmem:[%s466_s9] sm:$0xff] %v186_v15 }

</bundles_post_ra>
